<compile_context>
chip_gen: v5e
topology: v5e:2x2
jax: 0.10.0
libtpu: 0.0.40
codegen_flags: <defaults>
</compile_context>

<pallas_src>
import jax
import jax.numpy as jnp
import numpy as np
from jax import lax
from jax.experimental import pallas as pl
from jax.experimental.pallas import tpu as pltpu

# ---- model hyper-parameters (small, synthetic) ----
B = 2           # batch
CIN = 4         # input channels
H = W = 16      # spatial
CMID = 32       # hidden channels of the head
COUT = 8        # number of heatmap classes ('hm' channels)
KH = KW = 3     # 3x3 conv, padding 1, stride 1
KPATCH = KH * KW * CIN          # 36 : im2col contraction dim
NPIX = B * H * W                # 512 : lane-dense pixel dimension


def _hm_kernel(p_ref, w1_ref, b1_ref, w2_ref, b2_ref, o_ref):
    """Whole batch in one kernel body (single grid point), pixels on lanes.

    p_ref : (KPATCH, NPIX)  = (36, 512)  im2col patch matrix (lane-dense)
    w1_ref: (CMID, KPATCH)  = (32, 36)   flattened+transposed 3x3 conv weights
    b1_ref: (CMID, 1)
    w2_ref: (COUT, CMID)    = (8, 32)    transposed 1x1 conv weights
    b2_ref: (COUT, 1)
    o_ref : (COUT, NPIX)    = (8, 512)   unpadded, lane-dense heatmap output
    """
    # 3x3 conv == single MXU matmul over the im2col patches: (32,36)x(36,512).
    hidden = jnp.dot(w1_ref[...], p_ref[...],
                     preferred_element_type=jnp.float32)
    hidden = jnp.maximum(hidden + b1_ref[...], 0.0)          # bias + ReLU (VPU)

    # 1x1 conv (heatmap head): (8,32)x(32,512); store is full unmasked vst.
    hm = jnp.dot(w2_ref[...], hidden,
                 preferred_element_type=jnp.float32) + b2_ref[...]
    o_ref[...] = hm


def model_for_vis_forward(x_nchw, w1, b1, w2, b2):
    """Equivalent of ModelForVis.forward: returns outputs[0]['hm'] (NCHW)."""
    # ---- wrapper-side layout prep (XLA-fused under jit) ----
    # NCHW -> NHWC, zero-pad spatial dims, build im2col patches so the 3x3
    # conv is exactly one matmul inside the kernel.  Channel ordering of the
    # patch axis is (ky, kx, cin) with cin fastest, matching
    # w1.reshape(KPATCH, CMID) from (KH, KW, CIN, CMID).
    x_nhwc = jnp.transpose(x_nchw, (0, 2, 3, 1))                 # (B,H,W,CIN)
    x_pad = jnp.pad(x_nhwc, ((0, 0), (1, 1), (1, 1), (0, 0)))
    patches = jnp.concatenate(
        [x_pad[:, ky:ky + H, kx:kx + W, :]
         for ky in range(KH) for kx in range(KW)],
        axis=-1)                                                 # (B,H,W,36)
    # Pixels on the lane axis: (KPATCH, NPIX) = (36, 512), no lane padding.
    patches_t = patches.reshape(NPIX, KPATCH).T                  # (36, 512)

    # Weights / biases as MXU-ready 2-D tiles in the transposed convention.
    w1_t = w1.reshape(KPATCH, CMID).T                            # (32, 36)
    b1_t = b1.reshape(CMID, 1)                                   # (32, 1)
    w2_t = w2.T                                                  # (8, 32)
    b2_t = b2.reshape(COUT, 1)                                   # (8, 1)

    # Advisory cost hint for XLA's scheduler (overhead-dominated kernel).
    flops = 2 * NPIX * KPATCH * CMID + 2 * NPIX * CMID * COUT
    bytes_accessed = 4 * (KPATCH * NPIX + CMID * KPATCH + CMID
                          + COUT * CMID + COUT + COUT * NPIX)
    cost = pl.CostEstimate(flops=flops, transcendentals=0,
                           bytes_accessed=bytes_accessed)

    # Single grid point: whole problem is one resident VMEM block
    # (kilobytes of live data), no pipelining / per-step overhead.
    hm_flat = pl.pallas_call(
        _hm_kernel,
        out_shape=jax.ShapeDtypeStruct((COUT, NPIX), jnp.float32),
        in_specs=[pl.BlockSpec(memory_space=pltpu.MemorySpace.VMEM)] * 5,
        out_specs=pl.BlockSpec(memory_space=pltpu.MemorySpace.VMEM),
        cost_estimate=cost,
    )(patches_t, w1_t, b1_t, w2_t, b2_t)

    # (COUT, B*H*W) -> (B, COUT, H, W) : PyTorch NCHW convention.
    hm = hm_flat.reshape(COUT, B, H, W)
    return jnp.transpose(hm, (1, 0, 2, 3))


def _reference_forward(x_nchw, w1, b1, w2, b2):
    """Pure-JAX reference (lax.conv) for correctness checking."""
    x_nhwc = jnp.transpose(x_nchw, (0, 2, 3, 1))
    y = lax.conv_general_dilated(
        x_nhwc, w1, window_strides=(1, 1), padding="SAME",
        dimension_numbers=("NHWC", "HWIO", "NHWC"))
    y = jnp.maximum(y + b1[0], 0.0)
    hm = jnp.einsum("bhwc,co->bhwo", y, w2) + b2[0]
    return jnp.transpose(hm, (0, 3, 1, 2))


if __name__ == "__main__":
    key = jax.random.PRNGKey(0)
    k_x, k_w1, k_b1, k_w2, k_b2 = jax.random.split(key, 5)

    # Deterministic inputs and parameters (synthetic, no checkpoint).
    x = jax.random.normal(k_x, (B, CIN, H, W), dtype=jnp.float32)
    w1 = 0.1 * jax.random.normal(k_w1, (KH, KW, CIN, CMID), dtype=jnp.float32)
    b1 = 0.1 * jax.random.normal(k_b1, (1, CMID), dtype=jnp.float32)
    w2 = 0.1 * jax.random.normal(k_w2, (CMID, COUT), dtype=jnp.float32)
    b2 = 0.1 * jax.random.normal(k_b2, (1, COUT), dtype=jnp.float32)

    fwd = jax.jit(model_for_vis_forward)
    hm = fwd(x, w1, b1, w2, b2)
    jax.block_until_ready(hm)

    ref = _reference_forward(x, w1, b1, w2, b2)
    np.testing.assert_allclose(np.asarray(hm), np.asarray(ref),
                               rtol=1e-4, atol=1e-4)
    assert hm.shape == (B, COUT, H, W)

    print("KERNEL_OK")
</pallas_src>

<mosaic_0001>
module attributes {stable_mosaic.version = 11 : i64} {
  func.func @_hm_kernel(%arg0: memref<36x512xf32, #tpu.memory_space<vmem>>, %arg1: memref<32x36xf32, #tpu.memory_space<vmem>>, %arg2: memref<32x1xf32, #tpu.memory_space<vmem>>, %arg3: memref<8x32xf32, #tpu.memory_space<vmem>>, %arg4: memref<8x1xf32, #tpu.memory_space<vmem>>, %arg5: memref<8x512xf32, #tpu.memory_space<vmem>>) attributes {dimension_semantics = [], scalar_prefetch = 0 : i64, scratch_operands = 0 : i64, tpu.core_type = #tpu.core_type<tc>} {
    %c0 = arith.constant 0 : index
    %c0_0 = arith.constant 0 : index
    %0 = vector.load %arg1[%c0, %c0_0] : memref<32x36xf32, #tpu.memory_space<vmem>>, vector<32x36xf32>
    %c0_1 = arith.constant 0 : index
    %c0_2 = arith.constant 0 : index
    %1 = vector.load %arg0[%c0_1, %c0_2] : memref<36x512xf32, #tpu.memory_space<vmem>>, vector<36x512xf32>
    %cst = arith.constant dense<0.000000e+00> : vector<32x512xf32>
    %2 = tpu.matmul %0, %1, %cst {dimension_numbers = #tpu.dot_dimension_numbers<[1], [0], [0], [1], [0, 0, 1, 1], [], []>} : vector<32x36xf32>, vector<36x512xf32>, vector<32x512xf32> -> vector<32x512xf32>
    %c0_3 = arith.constant 0 : index
    %c0_4 = arith.constant 0 : index
    %3 = vector.load %arg2[%c0_3, %c0_4] : memref<32x1xf32, #tpu.memory_space<vmem>>, vector<32x1xf32>
    %4 = vector.broadcast %3 : vector<32x1xf32> to vector<32x512xf32>
    %5 = arith.addf %2, %4 : vector<32x512xf32>
    %cst_5 = arith.constant 0.000000e+00 : f32
    %6 = vector.broadcast %cst_5 : f32 to vector<32x512xf32>
    %7 = arith.maximumf %5, %6 : vector<32x512xf32>
    %c0_6 = arith.constant 0 : index
    %c0_7 = arith.constant 0 : index
    %8 = vector.load %arg3[%c0_6, %c0_7] : memref<8x32xf32, #tpu.memory_space<vmem>>, vector<8x32xf32>
    %cst_8 = arith.constant dense<0.000000e+00> : vector<8x512xf32>
    %9 = tpu.matmul %8, %7, %cst_8 {dimension_numbers = #tpu.dot_dimension_numbers<[1], [0], [0], [1], [0, 0, 1, 1], [], []>} : vector<8x32xf32>, vector<32x512xf32>, vector<8x512xf32> -> vector<8x512xf32>
    %c0_9 = arith.constant 0 : index
    %c0_10 = arith.constant 0 : index
    %10 = vector.load %arg4[%c0_9, %c0_10] : memref<8x1xf32, #tpu.memory_space<vmem>>, vector<8x1xf32>
    %11 = vector.broadcast %10 : vector<8x1xf32> to vector<8x512xf32>
    %12 = arith.addf %9, %11 : vector<8x512xf32>
    %c0_11 = arith.constant 0 : index
    %c0_12 = arith.constant 0 : index
    %13 = vector.load %arg5[%c0_11, %c0_12] : memref<8x512xf32, #tpu.memory_space<vmem>>, vector<8x512xf32>
    tpu.vector_store %arg5[%c0_11, %c0_12], %12 {strides = array<i32>} : memref<8x512xf32, #tpu.memory_space<vmem>>, vector<8x512xf32>,
    return
  }
}

</mosaic_0001>

<bundles_post_ra>
// kernel: model_for_vis_forward.1
= control target key start
LH: loop header
LB: loop body
LE: loop exit
PB: predicated region body
PF: predicated region fallthrough
CT: control target
= control target key end

     0   :  { %vm81_vm0 = vcmask 1043456   ;;  %v353_v3 = vmov 0   ;;  %vm68_vm1 = vcmask 293888   ;;  %vm233_vm2 = vcmask 261120   ;;  %s502_s0 = inlined_call_operand.vmem [shape: f32[36,512], index: 0, kind: input, shape index: {}]   ;;  %s503_s1 = inlined_call_operand.vmem [shape: f32[32,36], index: 1, kind: input, shape index: {}]   ;;  %s504_s2 = inlined_call_operand.vmem [shape: f32[32,1], index: 2, kind: input, shape index: {}]   ;;  %s505_s4 = inlined_call_operand.vmem [shape: f32[8,1], index: 4, kind: input, shape index: {}]   ;;  %s506_s3 = inlined_call_operand.vmem [shape: f32[8,32], index: 3, kind: input, shape index: {}]   ;;  %s507_s5 = inlined_call_operand.vmem [shape: f32[8,512], index: 5, kind: output, shape index: {}]  }
   0x1   :  { %v40_v0 = vld [vmem:[%s502_s0 + $0x80] sm:$0xf]  ;;  %v41_v1 = vld [vmem:[%s502_s0 + $0x88] sm:$0xf]  ;;  %v42_v2 = vld [vmem:[%s502_s0 + $0x90] sm:$0xf]  ;;  %351 = vset.pattern.permute.xlu1 %v353_v3  ;;  %350 = vset.pattern.permute.xlu0 %v353_v3 }
   0x2   :  { %325 = vmatpush.msk.msra.mxu0 %vm81_vm0, %v40_v0  ;;  %330 = vmatpush.msk.msra.mxu1 %vm81_vm0, %v41_v1  ;;  %v43_v4 = vld [vmem:[%s502_s0 + $0x98] sm:$0xf]  ;;  %v36_v5 = vld [vmem:[%s502_s0 + $0x60] sm:$0xff]  ;;  %v37_v6 = vld [vmem:[%s502_s0 + $0x68] sm:$0xff] }
   0x3   :  { %335 = vmatpush.msk.msra.mxu2 %vm81_vm0, %v42_v2  ;;  %340 = vmatpush.msk.msra.mxu3 %vm81_vm0, %v43_v4  ;;  %v38_v7 = vld [vmem:[%s502_s0 + $0x70] sm:$0xff]  ;;  %v39_v8 = vld [vmem:[%s502_s0 + $0x78] sm:$0xff]  ;;  %v32_v9 = vld [vmem:[%s502_s0 + $0x40] sm:$0xff] }
   0x4   :  { %106 = vmatpush.msra.mxu0 %v36_v5  ;;  %135 = vmatpush.msra.mxu1 %v37_v6  ;;  %v33_v10 = vld [vmem:[%s502_s0 + $0x48] sm:$0xff]  ;;  %v34_v11 = vld [vmem:[%s502_s0 + $0x50] sm:$0xff]  ;;  %v35_v12 = vld [vmem:[%s502_s0 + $0x58] sm:$0xff] }
   0x5   :  { %164 = vmatpush.msra.mxu2 %v38_v7  ;;  %193 = vmatpush.msra.mxu3 %v39_v8  ;;  %v28_v13 = vld [vmem:[%s502_s0 + $0x20] sm:$0xff]  ;;  %v29_v14 = vld [vmem:[%s502_s0 + $0x28] sm:$0xff]  ;;  %v30_v15 = vld [vmem:[%s502_s0 + $0x30] sm:$0xff] }
   0x6   :  { %107 = vmatpush.msra.mxu0 %v32_v9  ;;  %136 = vmatpush.msra.mxu1 %v33_v10  ;;  %v31_v16 = vld [vmem:[%s502_s0 + $0x38] sm:$0xff]  ;;  %v24_v17 = vld [vmem:[%s502_s0] sm:$0xff]  ;;  %v25_v18 = vld [vmem:[%s502_s0 + $0x8] sm:$0xff] }
   0x7   :  { %165 = vmatpush.msra.mxu2 %v34_v11  ;;  %194 = vmatpush.msra.mxu3 %v35_v12  ;;  %v26_v19 = vld [vmem:[%s502_s0 + $0x10] sm:$0xff]  ;;  %v27_v20 = vld [vmem:[%s502_s0 + $0x18] sm:$0xff]  ;;  %v20_v21 = vld [vmem:[%s503_s1] sm:$0xff] }
   0x8   :  { %108 = vmatpush.msra.mxu0 %v28_v13  ;;  %137 = vmatpush.msra.mxu1 %v29_v14  ;;  %v45_v22 = vld [vmem:[%s504_s2 + $0x8] sm:$0xff]  ;;  %v47_v23 = vld [vmem:[%s504_s2 + $0x18] sm:$0xff]  ;;  %v44_v25 = vld [vmem:[%s504_s2] sm:$0xff] }
   0x9   :  { %166 = vmatpush.msra.mxu2 %v30_v15  ;;  %195 = vmatpush.msra.mxu3 %v31_v16  ;;  %v21_v24 = vld [vmem:[%s503_s1 + $0x8] sm:$0xff]  ;;  %v46_v26 = vld [vmem:[%s504_s2 + $0x10] sm:$0xff]  ;;  %v23_v28 = vld [vmem:[%s503_s1 + $0x18] sm:$0xff] }
   0xa   :  { %109 = vmatpush.msra.mxu0 %v24_v17  ;;  %138 = vmatpush.msra.mxu1 %v25_v18  ;;  %v22_v27 = vld [vmem:[%s503_s1 + $0x10] sm:$0xff]  ;;  %v227_v35 = vld [vmem:[%s505_s4] sm:$0xff] }
   0xb   :  { %167 = vmatpush.msra.mxu2 %v26_v19  ;;  %196 = vmatpush.msra.mxu3 %v27_v20  ;;  %v226_v14 = vld [vmem:[%s506_s3] sm:$0xff] }
   0xc   :  { %326 = vmatmul.msk.f32.vlgmr.msra.gmra.mxu0 %vm68_vm1, %v20_v21  ;;  %331 = vmatmul.msk.f32.vlgmr.msra.gmra.mxu1 %vm68_vm1, %v20_v21 }
   0xd   :  { %336 = vmatmul.msk.f32.vlgmr.msra.gmra.mxu2 %vm68_vm1, %v20_v21  ;;  %341 = vmatmul.msk.f32.vlgmr.msra.gmra.mxu3 %vm68_vm1, %v20_v21 }
   0xe   :  { %55 = vperm.xlu1 %351, %v45_v22   ;;  %65 = vperm.xlu0 %350, %v47_v23  }
   0xf   :  { %352 = vset.pattern.permute.xlu2 %v353_v3 }
  0x10   :  { %230 = vperm.xlu2 %352, %v227_v35  }
  0x14   :  { %327 = vmatmul.msk.f32.gmra.mxu0 %vm68_vm1, %v21_v24  ;;  %332 = vmatmul.msk.f32.gmra.mxu1 %vm68_vm1, %v21_v24 }
  0x15   :  { %337 = vmatmul.msk.f32.gmra.mxu2 %vm68_vm1, %v21_v24  ;;  %342 = vmatmul.msk.f32.gmra.mxu3 %vm68_vm1, %v21_v24 }
  0x16   :  { %50 = vperm.xlu1 %351, %v44_v25   ;;  %60 = vperm.xlu0 %350, %v46_v26  }
  0x1c   :  { %328 = vmatmul.msk.f32.gmra.mxu0 %vm68_vm1, %v22_v27  ;;  %333 = vmatmul.msk.f32.gmra.mxu1 %vm68_vm1, %v22_v27 }
  0x1d   :  { %338 = vmatmul.msk.f32.gmra.mxu2 %vm68_vm1, %v22_v27  ;;  %343 = vmatmul.msk.f32.gmra.mxu3 %vm68_vm1, %v22_v27 }
  0x24   :  { %329 = vmatmul.msk.f32.gmra.mxu0 %vm68_vm1, %v23_v28  ;;  %334 = vmatmul.msk.f32.gmra.mxu1 %vm68_vm1, %v23_v28 }
  0x25   :  { %339 = vmatmul.msk.f32.gmra.mxu2 %vm68_vm1, %v23_v28  ;;  %344 = vmatmul.msk.f32.gmra.mxu3 %vm68_vm1, %v23_v28 }
  0x6a   :  { %v231_v19 = vpop.permute.xlu2 %230 }
  0x80   :  { %v66_v36 = vpop.permute.xlu0 %65  ;;  %v56_v41 = vpop.permute.xlu1 %55 }
  0x88   :  { %v61_v42 = vpop.permute.xlu0 %60  ;;  %v51_v55 = vpop.permute.xlu1 %50 }
  0x89   :  { %v111_v29 = vpop.f32.mrf.mxu0  ;;  %v140_v30 = vpop.f32.mrf.mxu1 }
  0x8a   :  { %v112_v58 = vadd.f32 %v111_v29, %v51_v55  ;;  %v141_v59 = vadd.f32 %v140_v30, %v51_v55 }
  0x8c   :  { %v210_v4 = vmax.f32 %v112_v58, 0.0  ;;  %v211_v5 = vmax.f32 %v141_v59, 0.0 }
  0x90   :  { %v169_v31 = vpop.f32.mrf.mxu2  ;;  %v198_v32 = vpop.f32.mrf.mxu3 }
  0x91   :  { %v114_v33 = vpop.f32.mrf.mxu0  ;;  %v143_v34 = vpop.f32.mrf.mxu1  ;;  %v170_v10 = vadd.f32 %v169_v31, %v51_v55  ;;  %v199_v11 = vadd.f32 %v198_v32, %v51_v55 }
  0x92   :  { %v115_v51 = vadd.f32 %v114_v33, %v56_v41  ;;  %v144_v52 = vadd.f32 %v143_v34, %v56_v41 }
  0x93   :  { %v212_v17 = vmax.f32 %v170_v10, 0.0  ;;  %v213_v18 = vmax.f32 %v199_v11, 0.0 }
  0x94   :  { %v214_v60 = vmax.f32 %v115_v51, 0.0  ;;  %v215_v61 = vmax.f32 %v144_v52, 0.0 }
  0x98   :  { %v172_v37 = vpop.f32.mrf.mxu2  ;;  %v201_v38 = vpop.f32.mrf.mxu3 }
  0x99   :  { %v117_v39 = vpop.f32.mrf.mxu0  ;;  %v146_v40 = vpop.f32.mrf.mxu1  ;;  %v173_v6 = vadd.f32 %v172_v37, %v56_v41  ;;  %v202_v7 = vadd.f32 %v201_v38, %v56_v41 }
  0x9a   :  { %v118_v49 = vadd.f32 %v117_v39, %v61_v42  ;;  %v147_v50 = vadd.f32 %v146_v40, %v61_v42 }
  0x9b   :  { %v216_v15 = vmax.f32 %v173_v6, 0.0  ;;  %v217_v16 = vmax.f32 %v202_v7, 0.0 }
  0x9c   :  { %v218_v56 = vmax.f32 %v118_v49, 0.0  ;;  %v219_v57 = vmax.f32 %v147_v50, 0.0 }
  0xa0   :  { %v175_v43 = vpop.f32.mrf.mxu2  ;;  %v204_v44 = vpop.f32.mrf.mxu3 }
  0xa1   :  { %v120_v45 = vpop.f32.mrf.mxu0  ;;  %v149_v46 = vpop.f32.mrf.mxu1  ;;  %v176_v0 = vadd.f32 %v175_v43, %v61_v42  ;;  %v205_v1 = vadd.f32 %v204_v44, %v61_v42 }
  0xa2   :  { %v121_v47 = vadd.f32 %v120_v45, %v66_v36  ;;  %v150_v48 = vadd.f32 %v149_v46, %v66_v36 }
  0xa3   :  { %v220_v12 = vmax.f32 %v176_v0, 0.0  ;;  %v221_v13 = vmax.f32 %v205_v1, 0.0 }
  0xa4   :  { %v222_v53 = vmax.f32 %v121_v47, 0.0  ;;  %v223_v54 = vmax.f32 %v150_v48, 0.0 }
  0xa6   :  { %249 = vmatpush.msrb.mxu0 %v222_v53  ;;  %269 = vmatpush.msrb.mxu1 %v223_v54 }
  0xa8   :  { %v178_v62 = vpop.f32.mrf.mxu2  ;;  %v207_v63 = vpop.f32.mrf.mxu3  ;;  %250 = vmatpush.msrb.mxu0 %v218_v56  ;;  %270 = vmatpush.msrb.mxu1 %v219_v57 }
  0xa9   :  { %v179_v2 = vadd.f32 %v178_v62, %v66_v36  ;;  %v208_v3 = vadd.f32 %v207_v63, %v66_v36 }
  0xaa   :  { %251 = vmatpush.msrb.mxu0 %v214_v60  ;;  %271 = vmatpush.msrb.mxu1 %v215_v61 }
  0xab   :  { %v224_v8 = vmax.f32 %v179_v2, 0.0  ;;  %v225_v9 = vmax.f32 %v208_v3, 0.0 }
  0xac   :  { %252 = vmatpush.msrb.mxu0 %v210_v4  ;;  %272 = vmatpush.msrb.mxu1 %v211_v5 }
  0xad   :  { %289 = vmatpush.msrb.mxu2 %v224_v8  ;;  %309 = vmatpush.msrb.mxu3 %v225_v9 }
  0xae   :  { %345 = vmatmul.msk.f32.vlgmr.msrb.gmra.mxu0 %vm233_vm2, %v226_v14  ;;  %346 = vmatmul.msk.f32.vlgmr.msrb.gmra.mxu1 %vm233_vm2, %v226_v14 }
  0xaf   :  { %290 = vmatpush.msrb.mxu2 %v220_v12  ;;  %310 = vmatpush.msrb.mxu3 %v221_v13 }
  0xb1   :  { %291 = vmatpush.msrb.mxu2 %v216_v15  ;;  %311 = vmatpush.msrb.mxu3 %v217_v16 }
  0xb3   :  { %292 = vmatpush.msrb.mxu2 %v212_v17  ;;  %312 = vmatpush.msrb.mxu3 %v213_v18 }
  0xb4   :  { %347 = vmatmul.msk.f32.vlgmr.msrb.gmra.mxu2 %vm233_vm2, %v226_v14  ;;  %348 = vmatmul.msk.f32.vlgmr.msrb.gmra.mxu3 %vm233_vm2, %v226_v14 }
 0x12b   :  { %v254_v20 = vpop.f32.mrf.mxu0  ;;  %v274_v21 = vpop.f32.mrf.mxu1 }
 0x12c   :  { %v255_v22 = vadd.f32 %v254_v20, %v231_v19  ;;  %v275_v23 = vadd.f32 %v274_v21, %v231_v19 }
 0x12e   :  { %317 = vst [vmem:[%s507_s5] sm:$0xff] %v255_v22 }
 0x12f   :  { %318 = vst [vmem:[%s507_s5 + $0x8] sm:$0xff] %v275_v23 }
 0x137   :  { %v294_v24 = vpop.f32.mrf.mxu2  ;;  %v314_v25 = vpop.f32.mrf.mxu3 }
 0x138   :  { %v295_v26 = vadd.f32 %v294_v24, %v231_v19  ;;  %v315_v27 = vadd.f32 %v314_v25, %v231_v19 }
 0x13a   :  { %319 = vst [vmem:[%s507_s5 + $0x10] sm:$0xff] %v295_v26 }
 0x13b   :  { %320 = vst [vmem:[%s507_s5 + $0x18] sm:$0xff] %v315_v27 }

</bundles_post_ra>
